<compile_context>
chip_gen: v5e
topology: v5e:2x2
jax: 0.10.0
libtpu: 0.0.40
codegen_flags: <defaults>
</compile_context>

<pallas_src>
import functools
from typing import NamedTuple

import jax
import jax.numpy as jnp
from jax.experimental import pallas as pl
from jax.experimental.pallas import tpu as pltpu


def _round_up(x, m):
    return ((x + m - 1) // m) * m


class TilePlan(NamedTuple):
    tm_max: int       # max M tile (actual tm chosen per call from batch)
    tn: int           # N (class_num) tile
    tk: int           # K (in_dim) tile
    collapse_k: bool  # True -> single K block, no accumulator / epilogue


# Scoped-VMEM limit: safe on v7x (64 MiB physical) and v5e/v6e (128 MiB).
_VMEM_LIMIT_BYTES = 48 * 1024 * 1024


def plan_classifier_tiles(in_dim, class_num, itemsize, *,
                          tm_max=512, tn_max=512, tk_max=2048,
                          vmem_budget_bytes=40 * 1024 * 1024):
    """Pick tile sizes once, outside the hot path.

    Sized so the double-buffered working set stays under `vmem_budget_bytes`
    (conservative w.r.t. v7x's 64 MiB physical VMEM).
    """
    n_aligned = _round_up(class_num, 128)
    tn = min(tn_max, n_aligned)
    # v7x megacore: classifier heads typically have a single M block (small
    # batch), so keep >=2 N blocks whenever class_num allows it so both
    # TensorCores get work through the "parallel" grid axes.
    if tn >= n_aligned and n_aligned >= 2 * 128:
        tn = _round_up(-(-n_aligned // 2), 128)

    k_aligned = _round_up(in_dim, 128)

    def working_set(tk, with_acc):
        ws = 2 * (tm_max * tk + tk * tn + tm_max * tn + tn) * itemsize
        if with_acc:
            ws += tm_max * tn * 4  # f32 accumulator scratch
        return ws

    # Preferred: collapse the reduction into one block (no acc / epilogue).
    if working_set(k_aligned, with_acc=False) <= vmem_budget_bytes:
        return TilePlan(tm_max, tn, k_aligned, True)

    # Fallback: K-tiled reduction with f32 accumulator.
    tk = _round_up(min(tk_max, k_aligned), 128)
    while tk > 256 and working_set(tk, with_acc=True) > vmem_budget_bytes:
        tk = _round_up(tk // 2, 128)
    return TilePlan(tm_max, tn, tk, False)


def prepare_classifier_params(w, b, plan, *, compute_dtype=None):
    """Pad (and optionally cast) the weights ONCE, outside the hot path.

    w: [class_num, in_dim] (PyTorch nn.Linear layout), b: [class_num]
    Returns w_p: [K_pad, N_pad] (= W^T, tile-aligned), b_p: [1, N_pad] (f32).
    """
    class_num, in_dim = w.shape
    k_p = _round_up(in_dim, plan.tk)
    n_p = _round_up(class_num, plan.tn)
    w_t = w.T
    if compute_dtype is not None:
        w_t = w_t.astype(compute_dtype)
    w_p = jnp.pad(w_t, ((0, k_p - in_dim), (0, n_p - class_num)))
    b_p = jnp.pad(b.astype(jnp.float32).reshape(1, class_num),
                  ((0, 0), (0, n_p - class_num)))
    return w_p, b_p


def _linear_kernel(x_ref, w_ref, b_ref, o_ref):
    # Single-K-block fast path: no accumulator RMW, no epilogue predication.
    o_ref[...] = (
        jnp.dot(x_ref[...], w_ref[...], preferred_element_type=jnp.float32)
        + b_ref[...]
    ).astype(o_ref.dtype)


def _linear_kernel_ktiled(x_ref, w_ref, b_ref, o_ref, acc_ref):
    # x_ref: [tm, tk]  w_ref: [tk, tn]  b_ref: [1, tn]
    # o_ref: [tm, tn]  acc_ref: [tm, tn] f32 (resident across the K axis)
    k = pl.program_id(2)

    @pl.when(k == 0)
    def _():
        acc_ref[...] = jnp.zeros_like(acc_ref)

    acc_ref[...] += jnp.dot(
        x_ref[...], w_ref[...], preferred_element_type=jnp.float32
    )

    # Epilogue only on the last K step: bias add + cast.
    @pl.when(k == pl.num_programs(2) - 1)
    def _():
        o_ref[...] = (acc_ref[...] + b_ref[...]).astype(o_ref.dtype)


@functools.partial(jax.jit, static_argnames=("class_num", "plan"))
def classifier_forward(x, w_p, b_p, *, class_num, plan):
    """y = x @ W^T + b using pre-padded weights `w_p` [K_pad, N_pad], `b_p` [1, N_pad]."""
    batch, in_dim = x.shape
    k_p, n_p = w_p.shape
    out_dtype = x.dtype

    # Optional low-precision compute path (weights already cast at prepare time).
    if x.dtype != w_p.dtype:
        x = x.astype(w_p.dtype)

    # Exact M tile for small batches (bounds padded-row waste), capped at tm_max.
    m_aligned = _round_up(batch, 8)
    tm = min(plan.tm_max, m_aligned)
    m_p = _round_up(m_aligned, tm)

    tn, tk = plan.tn, plan.tk
    assert n_p % tn == 0 and k_p % tk == 0

    # Only x is padded per call (zero K padding is mathematically neutral).
    x_p = x
    if (m_p, k_p) != (batch, in_dim):
        x_p = jnp.pad(x, ((0, m_p - batch), (0, k_p - in_dim)))

    itemsize = jnp.dtype(x_p.dtype).itemsize
    cost = pl.CostEstimate(
        flops=2 * m_p * k_p * n_p,
        transcendentals=0,
        bytes_accessed=(m_p * k_p + k_p * n_p) * itemsize + (n_p + m_p * n_p) * 4,
    )

    if plan.collapse_k:
        grid = (m_p // tm, n_p // tn)
        out = pl.pallas_call(
            _linear_kernel,
            out_shape=jax.ShapeDtypeStruct((m_p, n_p), out_dtype),
            grid_spec=pltpu.PrefetchScalarGridSpec(
                num_scalar_prefetch=0,
                grid=grid,
                in_specs=[
                    pl.BlockSpec((tm, tk), lambda i, j: (i, 0)),
                    pl.BlockSpec((tk, tn), lambda i, j: (0, j)),
                    pl.BlockSpec((1, tn), lambda i, j: (0, j)),
                ],
                out_specs=pl.BlockSpec((tm, tn), lambda i, j: (i, j)),
            ),
            compiler_params=pltpu.CompilerParams(
                dimension_semantics=("parallel", "parallel"),
                vmem_limit_bytes=_VMEM_LIMIT_BYTES,
            ),
            cost_estimate=cost,
        )(x_p, w_p, b_p)
    else:
        grid = (m_p // tm, n_p // tn, k_p // tk)
        out = pl.pallas_call(
            _linear_kernel_ktiled,
            out_shape=jax.ShapeDtypeStruct((m_p, n_p), out_dtype),
            grid_spec=pltpu.PrefetchScalarGridSpec(
                num_scalar_prefetch=0,
                grid=grid,
                in_specs=[
                    pl.BlockSpec((tm, tk), lambda i, j, k: (i, k)),
                    pl.BlockSpec((tk, tn), lambda i, j, k: (k, j)),
                    pl.BlockSpec((1, tn), lambda i, j, k: (0, j)),
                ],
                out_specs=pl.BlockSpec((tm, tn), lambda i, j, k: (i, j)),
                scratch_shapes=[pltpu.VMEM((tm, tn), jnp.float32)],
            ),
            compiler_params=pltpu.CompilerParams(
                dimension_semantics=("parallel", "parallel", "arbitrary"),
                vmem_limit_bytes=_VMEM_LIMIT_BYTES,
            ),
            cost_estimate=cost,
        )(x_p, w_p, b_p)

    return out[:batch, :class_num]


def init_classifier_params(key, in_dim, class_num, dtype=jnp.float32):
    """Deterministic init matching torch.nn.Linear's default (uniform +-1/sqrt(in_dim))."""
    k_w, k_b = jax.random.split(key)
    bound = 1.0 / jnp.sqrt(jnp.float32(in_dim))
    w = jax.random.uniform(k_w, (class_num, in_dim), dtype, -bound, bound)
    b = jax.random.uniform(k_b, (class_num,), dtype, -bound, bound)
    return w, b


if __name__ == "__main__":
    key = jax.random.PRNGKey(0)
    f32 = jnp.float32
    itemsize = jnp.dtype(f32).itemsize

    # --- Case 1: tiny demo shapes (K collapsed into a single block) ----------
    batch, in_dim, class_num = 8, 32, 16
    key, k_x, k_p = jax.random.split(key, 3)
    x = jax.random.normal(k_x, (batch, in_dim), f32)
    w, b = init_classifier_params(k_p, in_dim, class_num)

    plan = plan_classifier_tiles(in_dim, class_num, itemsize)
    w_p, b_p = prepare_classifier_params(w, b, plan)   # pad weights ONCE
    y = classifier_forward(x, w_p, b_p, class_num=class_num, plan=plan)
    jax.block_until_ready(y)

    y_ref = x @ w.T + b
    assert y.shape == (batch, class_num)
    assert jnp.allclose(y, y_ref, atol=1e-5, rtol=1e-5)

    # --- Case 2: force the K-tiled accumulator path (tiny VMEM budget) -------
    batch2, in_dim2, class_num2 = 16, 512, 160
    key, k_x2, k_p2 = jax.random.split(key, 3)
    x2 = jax.random.normal(k_x2, (batch2, in_dim2), f32)
    w2, b2 = init_classifier_params(k_p2, in_dim2, class_num2)

    plan2 = plan_classifier_tiles(in_dim2, class_num2, itemsize,
                                  vmem_budget_bytes=1 * 1024 * 1024)
    assert not plan2.collapse_k
    w2_p, b2_p = prepare_classifier_params(w2, b2, plan2)
    y2 = classifier_forward(x2, w2_p, b2_p, class_num=class_num2, plan=plan2)
    jax.block_until_ready(y2)

    y2_ref = x2 @ w2.T + b2
    assert y2.shape == (batch2, class_num2)
    assert jnp.allclose(y2, y2_ref, atol=1e-4, rtol=1e-4)

    print("KERNEL_OK")
</pallas_src>

<mosaic_0001>
module attributes {stable_mosaic.version = 11 : i64} {
  func.func @_linear_kernel(%arg0: i32, %arg1: i32, %arg2: memref<8x128xf32, #tpu.memory_space<vmem>>, %arg3: memref<128x128xf32, #tpu.memory_space<vmem>>, %arg4: memref<1x128xf32, #tpu.memory_space<vmem>>, %arg5: memref<8x128xf32, #tpu.memory_space<vmem>>) attributes {dimension_semantics = [#tpu.dimension_semantics<parallel>, #tpu.dimension_semantics<parallel>], iteration_bounds = array<i64: 1, 1>, scalar_prefetch = 0 : i64, scratch_operands = 0 : i64, tpu.core_type = #tpu.core_type<tc>, window_params = [{transform_indices = @transform_0, window_bounds = array<i64: 8, 128>}, {transform_indices = @transform_1, window_bounds = array<i64: 128, 128>}, {transform_indices = @transform_2, window_bounds = array<i64: 1, 128>}, {transform_indices = @transform_3, window_bounds = array<i64: 8, 128>}]} {
    %c0 = arith.constant 0 : index
    %c0_0 = arith.constant 0 : index
    %0 = vector.load %arg2[%c0, %c0_0] : memref<8x128xf32, #tpu.memory_space<vmem>>, vector<8x128xf32>
    %c0_1 = arith.constant 0 : index
    %c0_2 = arith.constant 0 : index
    %1 = vector.load %arg3[%c0_1, %c0_2] : memref<128x128xf32, #tpu.memory_space<vmem>>, vector<128x128xf32>
    %cst = arith.constant dense<0.000000e+00> : vector<8x128xf32>
    %2 = tpu.matmul %0, %1, %cst {dimension_numbers = #tpu.dot_dimension_numbers<[1], [0], [0], [1], [0, 0, 1, 1], [], []>} : vector<8x128xf32>, vector<128x128xf32>, vector<8x128xf32> -> vector<8x128xf32>
    %c0_3 = arith.constant 0 : index
    %c0_4 = arith.constant 0 : index
    %3 = vector.load %arg4[%c0_3, %c0_4] : memref<1x128xf32, #tpu.memory_space<vmem>>, vector<1x128xf32>
    %4 = vector.broadcast %3 : vector<1x128xf32> to vector<8x128xf32>
    %5 = arith.addf %2, %4 : vector<8x128xf32>
    %c0_5 = arith.constant 0 : index
    %c0_6 = arith.constant 0 : index
    %6 = vector.load %arg5[%c0_5, %c0_6] : memref<8x128xf32, #tpu.memory_space<vmem>>, vector<8x128xf32>
    tpu.vector_store %arg5[%c0_5, %c0_6], %5 {strides = array<i32>} : memref<8x128xf32, #tpu.memory_space<vmem>>, vector<8x128xf32>,
    return
  }
  func.func @transform_0(%arg0: i32, %arg1: i32) -> (i32, i32) {
    %c0_i32 = arith.constant 0 : i32
    %c0_i32_0 = arith.constant 0 : i32
    return %arg0, %c0_i32 : i32, i32
  }
  func.func @transform_1(%arg0: i32, %arg1: i32) -> (i32, i32) {
    %c0_i32 = arith.constant 0 : i32
    %c0_i32_0 = arith.constant 0 : i32
    return %c0_i32, %arg1 : i32, i32
  }
  func.func @transform_2(%arg0: i32, %arg1: i32) -> (i32, i32) {
    %c0_i32 = arith.constant 0 : i32
    %c0_i32_0 = arith.constant 0 : i32
    return %c0_i32, %arg1 : i32, i32
  }
  func.func @transform_3(%arg0: i32, %arg1: i32) -> (i32, i32) {
    %c0_i32 = arith.constant 0 : i32
    return %arg0, %arg1 : i32, i32
  }
}

</mosaic_0001>

<bundles_post_ra>
// kernel: classifier_forward.1
= control target key start
LH: loop header
LB: loop body
LE: loop exit
PB: predicated region body
PF: predicated region fallthrough
CT: control target
= control target key end

     0   :  { %8 = vsyncpa [#allocation3], 0  ;;  %s183_s0 = inlined_call_operand.vmem [shape: f32[8,128], index: 0, kind: input, shape index: {}]   ;;  %s184_s1 = inlined_call_operand.hbm [shape: f32[128,128], index: 1, kind: input, shape index: {}]   ;;  %s185_s2 = inlined_call_operand.vmem [shape: f32[1,128], index: 2, kind: input, shape index: {}]   ;;  %s186_s3 = inlined_call_operand.hbm [shape: f32[8,128], index: 3, kind: output, shape index: {}]  }
   0x1   :  { %9 = vsyncpa [#allocation4], 0  ;;  %s16_s14 = sshll.u32 %s184_s1, 4  ;;  %s147_s15 = smov [#allocation2]   ;;  %s17_s14 = int_to_ptr.hbm [resolvable:$true] %s16_s14 }
   0x2   :  { %s18_s16 = sshll.u32 %s147_s15, 4  ;;  %s148_s17 = smov 128   ;;  %s19_s16 = int_to_ptr.vmem [resolvable:$true] %s18_s16 }
   0x3   :  { %s149_s18 = smov 8  }
   0x4   :  { %24 = dma.hbm_to_vmem [thread:$0]  %s17_s14, 2048, %s19_s16, [#allocation3], %s148_s17, %s148_s17, %s149_s18  }
   0x5   :  { %143 = dma.done.wait [#allocation3], 2048  }
   0x6   :  { %144 = vsyncadd [#allocation3], 4294965248  ;;  %v47_v0 = vld [vmem:[#allocation2 + $0x78] sm:$0xff]  ;;  %v46_v1 = vld [vmem:[#allocation2 + $0x70] sm:$0xff]  ;;  %s150_s22 = smov [#allocation5]   ;;  %s80_s26 = sshll.u32 %s186_s3, 4  ;;  %s81_s26 = int_to_ptr.hbm [resolvable:$true] %s80_s26 }
   0x7   :  { %52 = vmatpush.msra.mxu0 %v47_v0  ;;  %v45_v2 = vld [vmem:[#allocation2 + $0x68] sm:$0xff]  ;;  %v44_v3 = vld [vmem:[#allocation2 + $0x60] sm:$0xff]  ;;  %v43_v4 = vld [vmem:[#allocation2 + $0x58] sm:$0xff]  ;;  %s78_s23 = sshll.u32 %s150_s22, 4  ;;  %s79_s23 = int_to_ptr.vmem [resolvable:$true] %s78_s23 }
   0x8   :  { %v42_v5 = vld [vmem:[#allocation2 + $0x50] sm:$0xff]  ;;  %v41_v6 = vld [vmem:[#allocation2 + $0x48] sm:$0xff]  ;;  %v40_v7 = vld [vmem:[#allocation2 + $0x40] sm:$0xff] }
   0x9   :  { %53 = vmatpush.msra.mxu0 %v46_v1  ;;  %v39_v8 = vld [vmem:[#allocation2 + $0x38] sm:$0xff]  ;;  %v38_v9 = vld [vmem:[#allocation2 + $0x30] sm:$0xff]  ;;  %v37_v10 = vld [vmem:[#allocation2 + $0x28] sm:$0xff] }
   0xa   :  { %v36_v11 = vld [vmem:[#allocation2 + $0x20] sm:$0xff]  ;;  %v35_v12 = vld [vmem:[#allocation2 + $0x18] sm:$0xff]  ;;  %v34_v13 = vld [vmem:[#allocation2 + $0x10] sm:$0xff] }
   0xb   :  { %54 = vmatpush.msra.mxu0 %v45_v2  ;;  %v33_v14 = vld [vmem:[#allocation2 + $0x8] sm:$0xff]  ;;  %v32_v15 = vld [vmem:[#allocation2] sm:$0xff] }
   0xc   :  { %v31_v16 = vld [vmem:[%s183_s0] sm:$0xff] }
   0xd   :  { %55 = vmatpush.msra.mxu0 %v44_v3  ;;  %v94_v17 = vld [vmem:[%s185_s2] ss:$0 sm:$0xff] }
   0xf   :  { %56 = vmatpush.msra.mxu0 %v43_v4 }
  0x11   :  { %57 = vmatpush.msra.mxu0 %v42_v5 }
  0x13   :  { %58 = vmatpush.msra.mxu0 %v41_v6 }
  0x15   :  { %59 = vmatpush.msra.mxu0 %v40_v7 }
  0x17   :  { %60 = vmatpush.msra.mxu0 %v39_v8 }
  0x19   :  { %61 = vmatpush.msra.mxu0 %v38_v9 }
  0x1b   :  { %62 = vmatpush.msra.mxu0 %v37_v10 }
  0x1d   :  { %63 = vmatpush.msra.mxu0 %v36_v11 }
  0x1f   :  { %64 = vmatpush.msra.mxu0 %v35_v12 }
  0x21   :  { %65 = vmatpush.msra.mxu0 %v34_v13 }
  0x23   :  { %66 = vmatpush.msra.mxu0 %v33_v14 }
  0x25   :  { %67 = vmatpush.msra.mxu0 %v32_v15 }
  0x26   :  { %68 = vmatmul.f32.vlgmr.msra.gmra.mxu0 %v31_v16 }
  0xa3   :  { %v69_v18 = vpop.f32.mrf.mxu0 }
  0xa4   :  { %v70_v19 = vadd.f32 %v94_v17, %v69_v18 }
  0xa6   :  { %72 = vst [vmem:[#allocation5] sm:$0xff] %v70_v19 }
  0xa7   :  { %83 = dma.vmem_to_hbm [thread:$0]  %s79_s23, 128, %s81_s26, [#allocation4]  }
  0xa8   :  { %145 = dma.done.wait [#allocation4], 128  }
  0xa9   :  { %146 = vsyncadd [#allocation4], 4294967168 }
  0xaa   :  { %88 = vsyncpa [#allocation3], 1 }
  0xab   :  { %89 = vsyncpa [#allocation4], 1 }

</bundles_post_ra>
